<compile_context>
chip_gen: v7x
topology: tpu7x:2x2x1
jax: 0.10.0
libtpu: 0.0.40
codegen_flags: <defaults>
</compile_context>

<pallas_src>
import functools

import jax
import jax.numpy as jnp
from jax import lax
from jax.experimental import pallas as pl
from jax.experimental.pallas import tpu as pltpu

ALPHA = 0.6                 # false-negative penalty weight
LMBD = 0.5                  # focal-CE vs focal-Tversky mix
GAMMA = 0.5                 # unified gamma
GAMMA_CF = 1.0 / GAMMA      # categorical focal exponent (= 2.0 -> explicit square)
GAMMA_FT = GAMMA            # focal tversky exponent
EPS_LOG = 1e-6
EPS_TV = 1e-6


def _unified_kernel(logits_ref, labels_ref, out_ref, *, hw, c):
    """grid = (D, n_pixel_tiles).

    out_ref block (3C+1, 1) is VMEM-resident across the pixel axis and holds
    [tp (C) | sum_p (C) | count (C) | focal_sum (1)] for the current d slice.
    """
    i = pl.program_id(1)
    nt = pl.num_programs(1)

    @pl.when(i == 0)
    def _():
        out_ref[...] = jnp.zeros_like(out_ref)

    x_in = logits_ref[...].astype(jnp.float32)     # (C, tn) logits
    labels = labels_ref[...].astype(jnp.int32)     # (1, tn) labels (widened in-kernel)
    tn = x_in.shape[1]

    def accumulate(x, valid):
        # `valid` is None on full interior tiles (all mask work skipped) and a
        # (1, tn) bool mask on the last (possibly ragged) tile of each d.
        if valid is not None:
            x = jnp.where(valid, x, 0.0)           # sanitize undefined tail lanes

        # softmax over the channel (sublane) axis; EUP approximate reciprocal.
        m = jnp.max(x, axis=0, keepdims=True)
        e = jnp.exp(x - m)
        inv = pl.reciprocal(jnp.sum(e, axis=0, keepdims=True), approx=True)
        p = e * inv                                # (C, tn)

        c_iota = lax.broadcasted_iota(jnp.int32, (c, tn), 0)
        oh = c_iota == labels
        if valid is not None:
            oh = oh & valid
        onehot = oh.astype(jnp.float32)            # (C, tn)
        po = p * onehot                            # p at the label channel only

        # Asymmetric categorical focal (suppress_bkg=True): only the label
        # channel of -onehot*log(p+eps) is nonzero -> one log per pixel; the
        # background modulator (1-p0)^(1/gamma) with gamma=0.5 is a square.
        p_label = jnp.sum(po, axis=0, keepdims=True)        # (1, tn)
        nll = -jnp.log(p_label + EPS_LOG)
        p0 = p[0:1, :]
        is_bkg = labels == 0
        mod = jnp.where(is_bkg, (1.0 - p0) * (1.0 - p0), 1.0)
        wgt = jnp.where(is_bkg, 1.0 - ALPHA, ALPHA)
        focal = wgt * mod * nll                    # (1, tn)

        p_for_sum = p
        if valid is not None:
            vf = valid.astype(jnp.float32)
            focal = focal * vf
            p_for_sum = p * vf

        # Lane reductions on the MXU (ones-vector matmul): no wide VMEM
        # accumulator RMW; results are tiny (., 1) columns. MXU is otherwise idle.
        ones_v = jnp.ones((tn, 1), jnp.float32)
        tp_c = jnp.dot(po, ones_v, preferred_element_type=jnp.float32)          # (C,1)
        sp_c = jnp.dot(p_for_sum, ones_v, preferred_element_type=jnp.float32)   # (C,1)
        cnt_c = jnp.dot(onehot, ones_v, preferred_element_type=jnp.float32)     # (C,1)
        foc_c = jnp.dot(focal, ones_v, preferred_element_type=jnp.float32)      # (1,1)

        out_ref[0:c, :] += tp_c
        out_ref[c:2 * c, :] += sp_c
        out_ref[2 * c:3 * c, :] += cnt_c
        out_ref[3 * c:3 * c + 1, :] += foc_c

    # Full interior tiles: no tail-mask work at all.
    @pl.when(i < nt - 1)
    def _():
        accumulate(x_in, None)

    # Last tile of this d: mask the ragged spatial tail exactly.
    @pl.when(i == nt - 1)
    def _():
        col = lax.broadcasted_iota(jnp.int32, (1, tn), 1) + i * tn
        accumulate(x_in, col < hw)


def _tpu_vmem_capacity_bytes():
    try:
        return int(pltpu.get_tpu_info().vmem_capacity_bytes)
    except Exception:
        return 64 * 1024 * 1024     # conservative default (v7x per-TensorCore VMEM)


def _pick_tile(hw, c, logit_bytes, label_bytes, vmem_cap):
    """Pixel-tile width (lanes).

    Large enough that each grid step moves >= ~0.5-1 MiB of HBM traffic (so the
    ~0.35 us fixed per-step overhead is amortized) and the per-tile VALU work
    dwarfs it, bounded by a VMEM budget: 2x double-buffered input blocks plus
    ~10 live (C, tn) f32 temporaries (wide accumulators are gone -> MXU).
    """
    per_lane = 2 * (c * logit_bytes + label_bytes) + 10 * c * 4
    budget = min(vmem_cap // 2, 48 * 1024 * 1024)
    tn = budget // per_lane
    # Per review: ~64K lanes on v5e/v6e (128 MiB VMEM), ~32K on v7x (64 MiB).
    hard_cap = 65536 if vmem_cap >= (96 << 20) else 32768
    tn = min(tn, hard_cap)
    tn = min(tn, pl.cdiv(hw, 128) * 128)   # never wider than the (padded) row
    return max(128, (tn // 128) * 128)


def unified_catfocal_focaltversky(y_pred_logits, y_true):
    """y_pred_logits: (D, C, H, W) float logits, y_true: (D, H, W) integer labels."""
    d, c, h, w = y_pred_logits.shape
    hw = h * w
    n = d * hw

    # Free reshapes only: no transpose / pad / dtype upcast in HBM.  Narrow
    # integer label dtypes pass through and are widened inside the kernel.
    logits = y_pred_logits.reshape(d, c, hw)
    if not jnp.issubdtype(y_true.dtype, jnp.integer):
        y_true = y_true.astype(jnp.int32)
    labels = y_true.reshape(d, 1, hw)

    vmem_cap = _tpu_vmem_capacity_bytes()
    tn = _pick_tile(hw, c, logits.dtype.itemsize, labels.dtype.itemsize, vmem_cap)
    nt = pl.cdiv(hw, tn)
    nrows = 3 * c + 1          # fused per-d output rows: tp | sum_p | count | focal

    kernel = functools.partial(_unified_kernel, hw=hw, c=c)

    cost = pl.CostEstimate(
        flops=int(d * hw * (14 * c + 24) + d * hw * 2 * nrows),
        transcendentals=int(d * hw * (c + 2)),            # C exps + 1 log + 1 recip
        bytes_accessed=int(d * c * hw * logits.dtype.itemsize
                           + d * hw * labels.dtype.itemsize
                           + d * nrows * 4),
    )

    # TODO(synk): on v7x, verify the "parallel" D axis actually shards across
    # both TensorCores (pltpu.CORE_PARALLEL / pl.core_map); for tiny D, split
    # HW across cores into partial outputs summed in the epilogue instead.
    out = pl.pallas_call(
        kernel,
        out_shape=jax.ShapeDtypeStruct((d, nrows, 1), jnp.float32),
        grid_spec=pltpu.PrefetchScalarGridSpec(
            num_scalar_prefetch=0,
            grid=(d, nt),
            in_specs=[
                pl.BlockSpec((None, c, tn), lambda dd, i: (dd, 0, i)),
                pl.BlockSpec((None, 1, tn), lambda dd, i: (dd, 0, i)),
            ],
            out_specs=pl.BlockSpec((None, nrows, 1), lambda dd, i: (dd, 0, 0)),
        ),
        compiler_params=pltpu.CompilerParams(
            dimension_semantics=("parallel", "arbitrary"),
            vmem_limit_bytes=int(max(32 << 20, min(vmem_cap - (8 << 20), 112 << 20))),
        ),
        cost_estimate=cost,
    )(logits, labels)

    # ----- tiny per-class epilogue (plain JAX, O(C) work) -----
    sums = jnp.sum(out[:, :, 0], axis=0)       # (3C+1,)
    tp = sums[0:c]
    sum_p = sums[c:2 * c]
    cnt = sums[2 * c:3 * c]
    focal_sum = sums[3 * c]

    cat_focal = focal_sum / n                  # mean over D*H*W of per-pixel channel sums

    fp = sum_p - tp                            # sum (1 - onehot) * p
    fn = cnt - tp                              # sum onehot * (1 - p)
    tversky = tp / (tp + ALPHA * fn + (1.0 - ALPHA) * fp + EPS_TV)
    # NOTE: like the PyTorch reference, (1-tversky)**(-gamma) is inf if a
    # foreground class is absent from both prediction and labels.
    bkg = (1.0 - tversky[0])[None]
    fg = (1.0 - tversky[1:]) * (1.0 - tversky[1:]) ** (-GAMMA_FT)
    focal_tversky = jnp.mean(jnp.concatenate([bkg, fg], axis=0))

    return LMBD * cat_focal + (1.0 - LMBD) * focal_tversky


def _reference(y_pred_logits, y_true):
    """Pure-JAX replica of the PyTorch forward (for verification)."""
    d, c, h, w = y_pred_logits.shape
    p = jax.nn.softmax(y_pred_logits.astype(jnp.float32), axis=1)
    oh = jax.nn.one_hot(y_true.astype(jnp.int32), c, axis=1, dtype=jnp.float32)

    ce = -oh * jnp.log(p + EPS_LOG)
    bkg_loss = (1.0 - ALPHA) * jnp.power(1.0 - p[:, 0], GAMMA_CF) * ce[:, 0]
    fg_loss = ALPHA * ce[:, 1:]
    focal = jnp.concatenate([bkg_loss[:, None], fg_loss], axis=1)
    cat_focal = jnp.mean(jnp.sum(focal, axis=1))

    tp = jnp.sum(p * oh, axis=(0, 2, 3))
    fp = jnp.sum((1.0 - oh) * p, axis=(0, 2, 3))
    fn = jnp.sum(oh * (1.0 - p), axis=(0, 2, 3))
    tversky = tp / (tp + ALPHA * fn + (1.0 - ALPHA) * fp + EPS_TV)
    bkg_t = (1.0 - tversky[0])[None]
    fg_t = (1.0 - tversky[1:]) * (1.0 - tversky[1:]) ** (-GAMMA_FT)
    ftl = jnp.mean(jnp.concatenate([bkg_t, fg_t], axis=0))

    return LMBD * cat_focal + (1.0 - LMBD) * ftl


if __name__ == "__main__":
    key = jax.random.PRNGKey(0)
    k1, k2 = jax.random.split(key)

    D, C, H, W = 2, 4, 16, 16
    y_pred = jax.random.normal(k1, (D, C, H, W), dtype=jnp.float32)
    y_true = jax.random.randint(k2, (D, H, W), 0, C, dtype=jnp.int32)

    out = unified_catfocal_focaltversky(y_pred, y_true)
    out = jax.block_until_ready(out)

    ref = jax.block_until_ready(_reference(y_pred, y_true))
    # Slightly looser tolerance than v1: approx-EUP reciprocal in the softmax.
    assert jnp.allclose(out, ref, rtol=2e-3, atol=2e-3), (out, ref)

    print("KERNEL_OK")
</pallas_src>

<mosaic_0001>
module attributes {stable_mosaic.version = 11 : i64} {
  func.func @_unified_kernel(%arg0: i32, %arg1: i32, %arg2: memref<1x4x256xf32, #tpu.memory_space<vmem>>, %arg3: memref<1x1x256xi32, #tpu.memory_space<vmem>>, %arg4: memref<1x13x1xf32, #tpu.memory_space<vmem>>) attributes {dimension_semantics = [#tpu.dimension_semantics<parallel>, #tpu.dimension_semantics<arbitrary>], iteration_bounds = array<i64: 2, 1>, scalar_prefetch = 0 : i64, scratch_operands = 0 : i64, tpu.core_type = #tpu.core_type<tc>, window_params = [{transform_indices = @transform_0, window_bounds = array<i64: 1, 4, 256>}, {transform_indices = @transform_1, window_bounds = array<i64: 1, 1, 256>}, {transform_indices = @transform_2, window_bounds = array<i64: 1, 13, 1>}]} {
    %c0_i32 = arith.constant 0 : i32
    %0 = arith.cmpi eq, %arg1, %c0_i32 : i32
    %1 = arith.extui %0 : i1 to i32
    %c0_i32_0 = arith.constant 0 : i32
    %2 = arith.cmpi ne, %1, %c0_i32_0 : i32
    scf.if %2 {
      %cst = arith.constant 0.000000e+00 : f32
      %13 = vector.broadcast %cst : f32 to vector<13x1xf32>
      %c0_10 = arith.constant 0 : index
      %c0_11 = arith.constant 0 : index
      %c0_12 = arith.constant 0 : index
      %14 = vector.load %arg4[%c0_10, %c0_11, %c0_12] : memref<1x13x1xf32, #tpu.memory_space<vmem>>, vector<1x13x1xf32>
      %15 = vector.shape_cast %14 : vector<1x13x1xf32> to vector<13x1xf32>
      %16 = vector.shape_cast %13 : vector<13x1xf32> to vector<1x13x1xf32>
      tpu.vector_store %arg4[%c0_10, %c0_11, %c0_12], %16 {strides = array<i32>} : memref<1x13x1xf32, #tpu.memory_space<vmem>>, vector<1x13x1xf32>,
    } else {
    }
    %c0 = arith.constant 0 : index
    %c0_1 = arith.constant 0 : index
    %c0_2 = arith.constant 0 : index
    %3 = vector.load %arg2[%c0, %c0_1, %c0_2] : memref<1x4x256xf32, #tpu.memory_space<vmem>>, vector<1x4x256xf32>
    %4 = vector.shape_cast %3 : vector<1x4x256xf32> to vector<4x256xf32>
    %c0_3 = arith.constant 0 : index
    %c0_4 = arith.constant 0 : index
    %c0_5 = arith.constant 0 : index
    %5 = vector.load %arg3[%c0_3, %c0_4, %c0_5] : memref<1x1x256xi32, #tpu.memory_space<vmem>>, vector<1x1x256xi32>
    %6 = vector.shape_cast %5 : vector<1x1x256xi32> to vector<1x256xi32>
    %c0_i32_6 = arith.constant 0 : i32
    %7 = arith.cmpi slt, %arg1, %c0_i32_6 : i32
    %8 = arith.extui %7 : i1 to i32
    %c0_i32_7 = arith.constant 0 : i32
    %9 = arith.cmpi ne, %8, %c0_i32_7 : i32
    scf.if %9 {
      %cst = arith.constant dense<0xFF800000> : vector<256xf32>
      %13 = vector.multi_reduction <maximumf>, %4, %cst [0] : vector<4x256xf32> to vector<256xf32>
      %14 = vector.shape_cast %13 : vector<256xf32> to vector<1x256xf32>
      %15 = vector.broadcast %14 : vector<1x256xf32> to vector<4x256xf32>
      %16 = arith.subf %4, %15 : vector<4x256xf32>
      %17 = math.exp %16 : vector<4x256xf32>
      %cst_10 = arith.constant dense<0.000000e+00> : vector<256xf32>
      %18 = vector.multi_reduction <add>, %17, %cst_10 [0] : vector<4x256xf32> to vector<256xf32>
      %19 = vector.shape_cast %18 : vector<256xf32> to vector<1x256xf32>
      %20 = tpu.reciprocal %19 {approx = true} : vector<1x256xf32> -> vector<1x256xf32>
      %21 = vector.broadcast %20 : vector<1x256xf32> to vector<4x256xf32>
      %22 = arith.mulf %17, %21 : vector<4x256xf32>
      %23 = tpu.iota {dimensions = array<i32: 0>} : vector<4x256xi32>
      %24 = vector.broadcast %6 : vector<1x256xi32> to vector<4x256xi32>
      %25 = arith.cmpi eq, %23, %24 : vector<4x256xi32>
      %26 = arith.extui %25 : vector<4x256xi1> to vector<4x256xi32>
      %27 = arith.sitofp %26 : vector<4x256xi32> to vector<4x256xf32>
      %28 = arith.mulf %22, %27 : vector<4x256xf32>
      %cst_11 = arith.constant dense<0.000000e+00> : vector<256xf32>
      %29 = vector.multi_reduction <add>, %28, %cst_11 [0] : vector<4x256xf32> to vector<256xf32>
      %30 = vector.shape_cast %29 : vector<256xf32> to vector<1x256xf32>
      %cst_12 = arith.constant 9.99999997E-7 : f32
      %31 = vector.broadcast %cst_12 : f32 to vector<1x256xf32>
      %32 = arith.addf %30, %31 : vector<1x256xf32>
      %33 = math.log %32 : vector<1x256xf32>
      %cst_13 = arith.constant 0.000000e+00 : f32
      %34 = vector.broadcast %cst_13 : f32 to vector<1x256xf32>
      %35 = arith.subf %34, %33 : vector<1x256xf32>
      %36 = vector.extract_strided_slice %22 {offsets = [0, 0], sizes = [1, 256], strides = [1, 1]} : vector<4x256xf32> to vector<1x256xf32>
      %c0_i32_14 = arith.constant 0 : i32
      %37 = vector.broadcast %c0_i32_14 : i32 to vector<1x256xi32>
      %38 = arith.cmpi eq, %6, %37 : vector<1x256xi32>
      %cst_15 = arith.constant 1.000000e+00 : f32
      %39 = vector.broadcast %cst_15 : f32 to vector<1x256xf32>
      %40 = arith.subf %39, %36 : vector<1x256xf32>
      %cst_16 = arith.constant 1.000000e+00 : f32
      %41 = vector.broadcast %cst_16 : f32 to vector<1x256xf32>
      %42 = arith.subf %41, %36 : vector<1x256xf32>
      %43 = arith.mulf %40, %42 : vector<1x256xf32>
      %cst_17 = arith.constant 1.000000e+00 : f32
      %44 = vector.broadcast %cst_17 : f32 to vector<1x256xf32>
      %45 = arith.select %38, %43, %44 : vector<1x256xi1>, vector<1x256xf32>
      %cst_18 = arith.constant 4.000000e-01 : f32
      %cst_19 = arith.constant 6.000000e-01 : f32
      %46 = vector.broadcast %cst_18 : f32 to vector<1x256xf32>
      %47 = vector.broadcast %cst_19 : f32 to vector<1x256xf32>
      %48 = arith.select %38, %46, %47 : vector<1x256xi1>, vector<1x256xf32>
      %49 = arith.mulf %48, %45 : vector<1x256xf32>
      %50 = arith.mulf %49, %35 : vector<1x256xf32>
      %cst_20 = arith.constant 1.000000e+00 : f32
      %51 = vector.broadcast %cst_20 : f32 to vector<256x1xf32>
      %cst_21 = arith.constant dense<0.000000e+00> : vector<4x1xf32>
      %52 = tpu.matmul %28, %51, %cst_21 {dimension_numbers = #tpu.dot_dimension_numbers<[1], [0], [0], [1], [0, 0, 1, 1], [], []>} : vector<4x256xf32>, vector<256x1xf32>, vector<4x1xf32> -> vector<4x1xf32>
      %cst_22 = arith.constant dense<0.000000e+00> : vector<4x1xf32>
      %53 = tpu.matmul %22, %51, %cst_22 {dimension_numbers = #tpu.dot_dimension_numbers<[1], [0], [0], [1], [0, 0, 1, 1], [], []>} : vector<4x256xf32>, vector<256x1xf32>, vector<4x1xf32> -> vector<4x1xf32>
      %cst_23 = arith.constant dense<0.000000e+00> : vector<4x1xf32>
      %54 = tpu.matmul %27, %51, %cst_23 {dimension_numbers = #tpu.dot_dimension_numbers<[1], [0], [0], [1], [0, 0, 1, 1], [], []>} : vector<4x256xf32>, vector<256x1xf32>, vector<4x1xf32> -> vector<4x1xf32>
      %cst_24 = arith.constant dense<0.000000e+00> : vector<1x1xf32>
      %55 = tpu.matmul %50, %51, %cst_24 {dimension_numbers = #tpu.dot_dimension_numbers<[1], [0], [0], [1], [0, 0, 1, 1], [], []>} : vector<1x256xf32>, vector<256x1xf32>, vector<1x1xf32> -> vector<1x1xf32>
      %c0_25 = arith.constant 0 : index
      %c0_26 = arith.constant 0 : index
      %c0_27 = arith.constant 0 : index
      %56 = vector.load %arg4[%c0_25, %c0_26, %c0_27] : memref<1x13x1xf32, #tpu.memory_space<vmem>>, vector<1x4x1xf32>
      %57 = vector.shape_cast %56 : vector<1x4x1xf32> to vector<4x1xf32>
      %58 = arith.addf %57, %52 : vector<4x1xf32>
      %c0_28 = arith.constant 0 : index
      %c0_29 = arith.constant 0 : index
      %c0_30 = arith.constant 0 : index
      %59 = vector.load %arg4[%c0_28, %c0_29, %c0_30] : memref<1x13x1xf32, #tpu.memory_space<vmem>>, vector<1x4x1xf32>
      %60 = vector.shape_cast %59 : vector<1x4x1xf32> to vector<4x1xf32>
      %61 = vector.shape_cast %58 : vector<4x1xf32> to vector<1x4x1xf32>
      tpu.vector_store %arg4[%c0_28, %c0_29, %c0_30], %61 {strides = array<i32>} : memref<1x13x1xf32, #tpu.memory_space<vmem>>, vector<1x4x1xf32>,
      %c0_31 = arith.constant 0 : index
      %c4 = arith.constant 4 : index
      %c0_32 = arith.constant 0 : index
      %62 = vector.load %arg4[%c0_31, %c4, %c0_32] : memref<1x13x1xf32, #tpu.memory_space<vmem>>, vector<1x4x1xf32>
      %63 = vector.shape_cast %62 : vector<1x4x1xf32> to vector<4x1xf32>
      %64 = arith.addf %63, %53 : vector<4x1xf32>
      %c0_33 = arith.constant 0 : index
      %c4_34 = arith.constant 4 : index
      %c0_35 = arith.constant 0 : index
      %65 = vector.load %arg4[%c0_33, %c4_34, %c0_35] : memref<1x13x1xf32, #tpu.memory_space<vmem>>, vector<1x4x1xf32>
      %66 = vector.shape_cast %65 : vector<1x4x1xf32> to vector<4x1xf32>
      %67 = vector.shape_cast %64 : vector<4x1xf32> to vector<1x4x1xf32>
      tpu.vector_store %arg4[%c0_33, %c4_34, %c0_35], %67 {strides = array<i32>} : memref<1x13x1xf32, #tpu.memory_space<vmem>>, vector<1x4x1xf32>,
      %c0_36 = arith.constant 0 : index
      %c8 = arith.constant 8 : index
      %c0_37 = arith.constant 0 : index
      %68 = vector.load %arg4[%c0_36, %c8, %c0_37] : memref<1x13x1xf32, #tpu.memory_space<vmem>>, vector<1x4x1xf32>
      %69 = vector.shape_cast %68 : vector<1x4x1xf32> to vector<4x1xf32>
      %70 = arith.addf %69, %54 : vector<4x1xf32>
      %c0_38 = arith.constant 0 : index
      %c8_39 = arith.constant 8 : index
      %c0_40 = arith.constant 0 : index
      %71 = vector.load %arg4[%c0_38, %c8_39, %c0_40] : memref<1x13x1xf32, #tpu.memory_space<vmem>>, vector<1x4x1xf32>
      %72 = vector.shape_cast %71 : vector<1x4x1xf32> to vector<4x1xf32>
      %73 = vector.shape_cast %70 : vector<4x1xf32> to vector<1x4x1xf32>
      tpu.vector_store %arg4[%c0_38, %c8_39, %c0_40], %73 {strides = array<i32>} : memref<1x13x1xf32, #tpu.memory_space<vmem>>, vector<1x4x1xf32>,
      %c0_41 = arith.constant 0 : index
      %c12 = arith.constant 12 : index
      %c0_42 = arith.constant 0 : index
      %74 = vector.load %arg4[%c0_41, %c12, %c0_42] : memref<1x13x1xf32, #tpu.memory_space<vmem>>, vector<1x1x1xf32>
      %75 = vector.shape_cast %74 : vector<1x1x1xf32> to vector<1x1xf32>
      %76 = arith.addf %75, %55 : vector<1x1xf32>
      %c0_43 = arith.constant 0 : index
      %c12_44 = arith.constant 12 : index
      %c0_45 = arith.constant 0 : index
      %77 = vector.load %arg4[%c0_43, %c12_44, %c0_45] : memref<1x13x1xf32, #tpu.memory_space<vmem>>, vector<1x1x1xf32>
      %78 = vector.shape_cast %77 : vector<1x1x1xf32> to vector<1x1xf32>
      %79 = vector.shape_cast %76 : vector<1x1xf32> to vector<1x1x1xf32>
      tpu.vector_store %arg4[%c0_43, %c12_44, %c0_45], %79 {strides = array<i32>} : memref<1x13x1xf32, #tpu.memory_space<vmem>>, vector<1x1x1xf32>,
    } else {
    }
    %c0_i32_8 = arith.constant 0 : i32
    %10 = arith.cmpi eq, %arg1, %c0_i32_8 : i32
    %11 = arith.extui %10 : i1 to i32
    %c0_i32_9 = arith.constant 0 : i32
    %12 = arith.cmpi ne, %11, %c0_i32_9 : i32
    scf.if %12 {
      %13 = tpu.iota {dimensions = array<i32: 1>} : vector<1x256xi32>
      %c256_i32 = arith.constant 256 : i32
      %14 = arith.muli %arg1, %c256_i32 : i32
      %15 = vector.broadcast %14 : i32 to vector<1x256xi32>
      %16 = arith.addi %13, %15 : vector<1x256xi32>
      %c256_i32_10 = arith.constant 256 : i32
      %17 = vector.broadcast %c256_i32_10 : i32 to vector<1x256xi32>
      %18 = arith.cmpi slt, %16, %17 : vector<1x256xi32>
      %cst = arith.constant 0.000000e+00 : f32
      %19 = vector.shape_cast %18 : vector<1x256xi1> to vector<1x256xi1>
      %20 = vector.broadcast %19 : vector<1x256xi1> to vector<4x256xi1>
      %21 = vector.broadcast %cst : f32 to vector<4x256xf32>
      %22 = arith.select %20, %4, %21 : vector<4x256xi1>, vector<4x256xf32>
      %cst_11 = arith.constant dense<0xFF800000> : vector<256xf32>
      %23 = vector.multi_reduction <maximumf>, %22, %cst_11 [0] : vector<4x256xf32> to vector<256xf32>
      %24 = vector.shape_cast %23 : vector<256xf32> to vector<1x256xf32>
      %25 = vector.broadcast %24 : vector<1x256xf32> to vector<4x256xf32>
      %26 = arith.subf %22, %25 : vector<4x256xf32>
      %27 = math.exp %26 : vector<4x256xf32>
      %cst_12 = arith.constant dense<0.000000e+00> : vector<256xf32>
      %28 = vector.multi_reduction <add>, %27, %cst_12 [0] : vector<4x256xf32> to vector<256xf32>
      %29 = vector.shape_cast %28 : vector<256xf32> to vector<1x256xf32>
      %30 = tpu.reciprocal %29 {approx = true} : vector<1x256xf32> -> vector<1x256xf32>
      %31 = vector.broadcast %30 : vector<1x256xf32> to vector<4x256xf32>
      %32 = arith.mulf %27, %31 : vector<4x256xf32>
      %33 = tpu.iota {dimensions = array<i32: 0>} : vector<4x256xi32>
      %34 = vector.broadcast %6 : vector<1x256xi32> to vector<4x256xi32>
      %35 = arith.cmpi eq, %33, %34 : vector<4x256xi32>
      %36 = vector.broadcast %18 : vector<1x256xi1> to vector<4x256xi1>
      %37 = arith.andi %35, %36 : vector<4x256xi1>
      %38 = arith.extui %37 : vector<4x256xi1> to vector<4x256xi32>
      %39 = arith.sitofp %38 : vector<4x256xi32> to vector<4x256xf32>
      %40 = arith.mulf %32, %39 : vector<4x256xf32>
      %cst_13 = arith.constant dense<0.000000e+00> : vector<256xf32>
      %41 = vector.multi_reduction <add>, %40, %cst_13 [0] : vector<4x256xf32> to vector<256xf32>
      %42 = vector.shape_cast %41 : vector<256xf32> to vector<1x256xf32>
      %cst_14 = arith.constant 9.99999997E-7 : f32
      %43 = vector.broadcast %cst_14 : f32 to vector<1x256xf32>
      %44 = arith.addf %42, %43 : vector<1x256xf32>
      %45 = math.log %44 : vector<1x256xf32>
      %cst_15 = arith.constant 0.000000e+00 : f32
      %46 = vector.broadcast %cst_15 : f32 to vector<1x256xf32>
      %47 = arith.subf %46, %45 : vector<1x256xf32>
      %48 = vector.extract_strided_slice %32 {offsets = [0, 0], sizes = [1, 256], strides = [1, 1]} : vector<4x256xf32> to vector<1x256xf32>
      %c0_i32_16 = arith.constant 0 : i32
      %49 = vector.broadcast %c0_i32_16 : i32 to vector<1x256xi32>
      %50 = arith.cmpi eq, %6, %49 : vector<1x256xi32>
      %cst_17 = arith.constant 1.000000e+00 : f32
      %51 = vector.broadcast %cst_17 : f32 to vector<1x256xf32>
      %52 = arith.subf %51, %48 : vector<1x256xf32>
      %cst_18 = arith.constant 1.000000e+00 : f32
      %53 = vector.broadcast %cst_18 : f32 to vector<1x256xf32>
      %54 = arith.subf %53, %48 : vector<1x256xf32>
      %55 = arith.mulf %52, %54 : vector<1x256xf32>
      %cst_19 = arith.constant 1.000000e+00 : f32
      %56 = vector.broadcast %cst_19 : f32 to vector<1x256xf32>
      %57 = arith.select %50, %55, %56 : vector<1x256xi1>, vector<1x256xf32>
      %cst_20 = arith.constant 4.000000e-01 : f32
      %cst_21 = arith.constant 6.000000e-01 : f32
      %58 = vector.broadcast %cst_20 : f32 to vector<1x256xf32>
      %59 = vector.broadcast %cst_21 : f32 to vector<1x256xf32>
      %60 = arith.select %50, %58, %59 : vector<1x256xi1>, vector<1x256xf32>
      %61 = arith.mulf %60, %57 : vector<1x256xf32>
      %62 = arith.mulf %61, %47 : vector<1x256xf32>
      %63 = arith.extui %18 : vector<1x256xi1> to vector<1x256xi32>
      %64 = arith.sitofp %63 : vector<1x256xi32> to vector<1x256xf32>
      %65 = arith.mulf %62, %64 : vector<1x256xf32>
      %66 = vector.broadcast %64 : vector<1x256xf32> to vector<4x256xf32>
      %67 = arith.mulf %32, %66 : vector<4x256xf32>
      %cst_22 = arith.constant 1.000000e+00 : f32
      %68 = vector.broadcast %cst_22 : f32 to vector<256x1xf32>
      %cst_23 = arith.constant dense<0.000000e+00> : vector<4x1xf32>
      %69 = tpu.matmul %40, %68, %cst_23 {dimension_numbers = #tpu.dot_dimension_numbers<[1], [0], [0], [1], [0, 0, 1, 1], [], []>} : vector<4x256xf32>, vector<256x1xf32>, vector<4x1xf32> -> vector<4x1xf32>
      %cst_24 = arith.constant dense<0.000000e+00> : vector<4x1xf32>
      %70 = tpu.matmul %67, %68, %cst_24 {dimension_numbers = #tpu.dot_dimension_numbers<[1], [0], [0], [1], [0, 0, 1, 1], [], []>} : vector<4x256xf32>, vector<256x1xf32>, vector<4x1xf32> -> vector<4x1xf32>
      %cst_25 = arith.constant dense<0.000000e+00> : vector<4x1xf32>
      %71 = tpu.matmul %39, %68, %cst_25 {dimension_numbers = #tpu.dot_dimension_numbers<[1], [0], [0], [1], [0, 0, 1, 1], [], []>} : vector<4x256xf32>, vector<256x1xf32>, vector<4x1xf32> -> vector<4x1xf32>
      %cst_26 = arith.constant dense<0.000000e+00> : vector<1x1xf32>
      %72 = tpu.matmul %65, %68, %cst_26 {dimension_numbers = #tpu.dot_dimension_numbers<[1], [0], [0], [1], [0, 0, 1, 1], [], []>} : vector<1x256xf32>, vector<256x1xf32>, vector<1x1xf32> -> vector<1x1xf32>
      %c0_27 = arith.constant 0 : index
      %c0_28 = arith.constant 0 : index
      %c0_29 = arith.constant 0 : index
      %73 = vector.load %arg4[%c0_27, %c0_28, %c0_29] : memref<1x13x1xf32, #tpu.memory_space<vmem>>, vector<1x4x1xf32>
      %74 = vector.shape_cast %73 : vector<1x4x1xf32> to vector<4x1xf32>
      %75 = arith.addf %74, %69 : vector<4x1xf32>
      %c0_30 = arith.constant 0 : index
      %c0_31 = arith.constant 0 : index
      %c0_32 = arith.constant 0 : index
      %76 = vector.load %arg4[%c0_30, %c0_31, %c0_32] : memref<1x13x1xf32, #tpu.memory_space<vmem>>, vector<1x4x1xf32>
      %77 = vector.shape_cast %76 : vector<1x4x1xf32> to vector<4x1xf32>
      %78 = vector.shape_cast %75 : vector<4x1xf32> to vector<1x4x1xf32>
      tpu.vector_store %arg4[%c0_30, %c0_31, %c0_32], %78 {strides = array<i32>} : memref<1x13x1xf32, #tpu.memory_space<vmem>>, vector<1x4x1xf32>,
      %c0_33 = arith.constant 0 : index
      %c4 = arith.constant 4 : index
      %c0_34 = arith.constant 0 : index
      %79 = vector.load %arg4[%c0_33, %c4, %c0_34] : memref<1x13x1xf32, #tpu.memory_space<vmem>>, vector<1x4x1xf32>
      %80 = vector.shape_cast %79 : vector<1x4x1xf32> to vector<4x1xf32>
      %81 = arith.addf %80, %70 : vector<4x1xf32>
      %c0_35 = arith.constant 0 : index
      %c4_36 = arith.constant 4 : index
      %c0_37 = arith.constant 0 : index
      %82 = vector.load %arg4[%c0_35, %c4_36, %c0_37] : memref<1x13x1xf32, #tpu.memory_space<vmem>>, vector<1x4x1xf32>
      %83 = vector.shape_cast %82 : vector<1x4x1xf32> to vector<4x1xf32>
      %84 = vector.shape_cast %81 : vector<4x1xf32> to vector<1x4x1xf32>
      tpu.vector_store %arg4[%c0_35, %c4_36, %c0_37], %84 {strides = array<i32>} : memref<1x13x1xf32, #tpu.memory_space<vmem>>, vector<1x4x1xf32>,
      %c0_38 = arith.constant 0 : index
      %c8 = arith.constant 8 : index
      %c0_39 = arith.constant 0 : index
      %85 = vector.load %arg4[%c0_38, %c8, %c0_39] : memref<1x13x1xf32, #tpu.memory_space<vmem>>, vector<1x4x1xf32>
      %86 = vector.shape_cast %85 : vector<1x4x1xf32> to vector<4x1xf32>
      %87 = arith.addf %86, %71 : vector<4x1xf32>
      %c0_40 = arith.constant 0 : index
      %c8_41 = arith.constant 8 : index
      %c0_42 = arith.constant 0 : index
      %88 = vector.load %arg4[%c0_40, %c8_41, %c0_42] : memref<1x13x1xf32, #tpu.memory_space<vmem>>, vector<1x4x1xf32>
      %89 = vector.shape_cast %88 : vector<1x4x1xf32> to vector<4x1xf32>
      %90 = vector.shape_cast %87 : vector<4x1xf32> to vector<1x4x1xf32>
      tpu.vector_store %arg4[%c0_40, %c8_41, %c0_42], %90 {strides = array<i32>} : memref<1x13x1xf32, #tpu.memory_space<vmem>>, vector<1x4x1xf32>,
      %c0_43 = arith.constant 0 : index
      %c12 = arith.constant 12 : index
      %c0_44 = arith.constant 0 : index
      %91 = vector.load %arg4[%c0_43, %c12, %c0_44] : memref<1x13x1xf32, #tpu.memory_space<vmem>>, vector<1x1x1xf32>
      %92 = vector.shape_cast %91 : vector<1x1x1xf32> to vector<1x1xf32>
      %93 = arith.addf %92, %72 : vector<1x1xf32>
      %c0_45 = arith.constant 0 : index
      %c12_46 = arith.constant 12 : index
      %c0_47 = arith.constant 0 : index
      %94 = vector.load %arg4[%c0_45, %c12_46, %c0_47] : memref<1x13x1xf32, #tpu.memory_space<vmem>>, vector<1x1x1xf32>
      %95 = vector.shape_cast %94 : vector<1x1x1xf32> to vector<1x1xf32>
      %96 = vector.shape_cast %93 : vector<1x1xf32> to vector<1x1x1xf32>
      tpu.vector_store %arg4[%c0_45, %c12_46, %c0_47], %96 {strides = array<i32>} : memref<1x13x1xf32, #tpu.memory_space<vmem>>, vector<1x1x1xf32>,
    } else {
    }
    return
  }
  func.func @transform_0(%arg0: i32, %arg1: i32) -> (i32, i32, i32) {
    %c0_i32 = arith.constant 0 : i32
    %c0_i32_0 = arith.constant 0 : i32
    return %arg0, %c0_i32, %arg1 : i32, i32, i32
  }
  func.func @transform_1(%arg0: i32, %arg1: i32) -> (i32, i32, i32) {
    %c0_i32 = arith.constant 0 : i32
    %c0_i32_0 = arith.constant 0 : i32
    return %arg0, %c0_i32, %arg1 : i32, i32, i32
  }
  func.func @transform_2(%arg0: i32, %arg1: i32) -> (i32, i32, i32) {
    %c0_i32 = arith.constant 0 : i32
    %c0_i32_0 = arith.constant 0 : i32
    %c0_i32_1 = arith.constant 0 : i32
    return %arg0, %c0_i32, %c0_i32_0 : i32, i32, i32
  }
}

</mosaic_0001>

<bundles_post_ra>
// kernel: tpu_custom_call.1
= control target key start
LH: loop header
LB: loop body
LE: loop exit
PB: predicated region body
PF: predicated region fallthrough
CT: control target
= control target key end

     0   :  { %7 = vsyncpa [#allocation3], 0  ;;  %s1999_s0 = inlined_call_operand.hbm [shape: f32[2,4,256], index: 0, kind: input, shape index: {}]   ;;  %s2000_s1 = inlined_call_operand.hbm [shape: s32[2,1,256], index: 1, kind: input, shape index: {}]   ;;  %s2001_s2 = inlined_call_operand.vmem [shape: f32[2,13,1], index: 2, kind: output, shape index: {}]  }
   0x1   :  { %9 = vsyncpa [#allocation3 + $0x1], 0 }
   0x2   :  { %10 = vsyncpa [#allocation5], 0 }
   0x3   :  { %12 = vsyncpa [#allocation5 + $0x1], 0  ;;  %s1707_s9 = smov 0   ;;  %s1709_s10 = smov 0  }
   0x4   :  { %s1711_s11 = smov 0   ;;  %s1713_s12 = smov 0  }
   0x5   :  { %s1715_s13 = smov 0   ;;  %s1717_s14 = smov 0  }
   0x6 LB: > { %s1259_s15 = sadd.s32 4294967295, %s1683_s14   ;;  %s30_s16 = sadd.s32 1, %s1679_s13  ;;  %s1683_s14 = sphi %s1717_s14, %s18_s14   ;;  %s1679_s13 = sphi %s1715_s13, %s2015_s13   ;;  %s1675_s12 = sphi %s1713_s12, %s2014_s12   ;;  %s1671_s11 = sphi %s1711_s11, %s2013_s11   ;;  %s1667_s10 = sphi %s1709_s10, %s2012_s10   ;;  %s1663_s9 = sphi %s1707_s9, %s2011_s9  }
   0x7   : > { %p32_p0 = scmp.ge.s32.totalorder %s30_s16, 2  ;;  %s39_s17 = sadd.s32 1, %s1671_s11 }
   0x8   : > { %p46_p1 = scmp.ne.s32.totalorder %s1671_s11, %s1667_s10  ;;  %p47_p2 = scmp.eq.s32.totalorder %s1683_s14, 0 }
   0x9   : > { %s2017_s16 = smov (%p32_p0, %s30_s16), 0  ;;  %p52_p4 = scmp.ne.s32.totalorder %s1667_s10, %s1663_s9 }
   0xa   : > { %p1743_p3 = por %p47_p2, %p46_p1  ;;  %s34_s19 = ssub.s32 %s1679_s13, %s2017_s16 }
   0xb   : > { %p53_p5 = scmp.eq.s32.totalorder %s1259_s15, 0  ;;  %p37_p6 = scmp.eq.s32.totalorder %s34_s19, 0 }
   0xc   : > { %p1502_p8 = scmp.lt.s32.totalorder %s1683_s14, 2  ;;  %s1759_s22 = sand.u32 1, %s1671_s11  }
   0xd   : > { %p1750_p7 = por %p53_p5, %p52_p4  ;;  %s1284_s23 = sshll.u32 %s1679_s13, 7 }
   0xe   : > { %s1756_s21 = scalar_select %p37_p6, %s1671_s11, %s39_s17  }
   0xf   : > { %s2004_s20 = scalar_select %p1750_p7, 1, 0 }
  0x10   : > { %s1263_s24 = sshll.u32 %s1759_s22, 3  ;;  %s1766_s27 = scalar_lea.hbm %s1999_s0, %s1284_s23 }
  0x11   : > { %s134_s28 = scalar_lea.vmem [#allocation2], %s1263_s24  ;;  %p1770_p9 = pnand %p1502_p8, %p1743_p3 }
  0x12   : > { %s144_s29 = sshll.u32 %s134_s28, 4  ;;  %s131_s3 = scalar_lea.sflag [#allocation3], %s1759_s22  ;;  %s1774_s29 = int_to_ptr.vmem [resolvable:$true] %s144_s29 }
  0x13   : > { %s1569_s4 = scalar_lea.hbm %s1766_s27, 128  ;;  %p1571_p13 = pneg %p1770_p9 }
  0x14   : > { %p1570_p12 = scmp.ne.s32.totalorder %s1766_s27, %s1569_s4  ;;  %s1574_s7 = scalar_lea.hbm %s1999_s0, 256 }
  0x15   : > { %p1575_p2 = scmp.lt.u32.totalorder %s1766_s27, %s1999_s0  ;;  %p1576_p3 = scmp.lt.u32.totalorder %s1574_s7, %s1569_s4 }
  0x16   : > { %p1572_p0 = pnand %p1571_p13, %p1570_p12  ;;  %p1578_p5 = scmp.lt.u32.totalorder %s1569_s4, %s1766_s27 }
  0x17   : > { %p1577_p4 = por %p1576_p3, %p1575_p2 }
  0x18   : > { %p1573_p1 = pneg %p1572_p0 }
  0x19   : > { %p1579_p6 = por %p1578_p5, %p1577_p4 }
  0x1b   : > { %p1580_p8 = pnand %p1579_p6, %p1573_p1 }
  0x1d   : > { %1583 = shalt.err (!%p1580_p8)
}
  0x1e   : > { %s1584_s15 = scalar_lea.vmem %s1774_s29, 128  ;;  %s1685_s17 = smov [#allocation2]  }
  0x1f   : > { %p1585_p12 = scmp.ne.s32.totalorder %s1774_s29, %s1584_s15  ;;  %s1589_s18 = sshll.u32 %s1685_s17, 4  ;;  %s1590_s18 = int_to_ptr.vmem [resolvable:$false] %s1589_s18 }
  0x20   : > { %s1591_s19 = scalar_lea.vmem %s1590_s18, 256  ;;  %p1592_p11 = scmp.lt.s32.totalorder %s1774_s29, %s1590_s18 }
  0x21   : > { %p1587_p0 = pnand %p1585_p12, %p1571_p13  ;;  %p1593_p2 = scmp.lt.s32.totalorder %s1591_s19, %s1584_s15 }
  0x23   : > { %p1588_p10 = pneg %p1587_p0  ;;  %p1594_p3 = por %p1593_p2, %p1592_p11 }
  0x25   : > { %p1595_p4 = pnand %p1594_p3, %p1588_p10 }
  0x27   : > { %1598 = shalt.err (!%p1595_p4)
}
  0x28   : > { %1498 = dma.hbm_to_vmem [thread:$0]  (!%p1770_p9), %s1766_s27, 128, %s1774_s29, %s131_s3  }
  0x29   : > { %p2006_p1 = scmp.lt.s32.totalorder %s1683_s14, 3  ;;  %p2007_p5 = scmp.ge.s32.totalorder %s1683_s14, 1 }
  0x2a   : > { %s1266_s24 = sshll.u32 %s1759_s22, 1  ;;  %s1285_s25 = sshll.u32 %s1679_s13, 5 }
  0x2b   : > { %p1808_p6 = pnand %p2007_p5, %p2006_p1  ;;  %s1817_s4 = scalar_lea.hbm %s2000_s1, %s1285_s25 }
  0x2c   : > { %s155_s5 = scalar_lea.vmem [#allocation4], %s1266_s24  ;;  %s152_s27 = scalar_lea.sflag [#allocation5], %s1759_s22 }
  0x2d   : > { %s2008_s23 = scalar_select %p1808_p6, 1, 0 }
  0x2e   : > { %s165_s6 = sshll.u32 %s155_s5, 4  ;;  %s1599_s29 = scalar_lea.hbm %s1817_s4, 32  ;;  %s166_s6 = int_to_ptr.vmem [resolvable:$true] %s165_s6 }
  0x2f   : > { %p1600_p10 = scmp.ne.s32.totalorder %s1817_s4, %s1599_s29  ;;  %s1604_s8 = scalar_lea.hbm %s2000_s1, 64 }
  0x30   : > { %p1605_p12 = scmp.lt.u32.totalorder %s1817_s4, %s2000_s1  ;;  %p1606_p0 = scmp.lt.u32.totalorder %s1604_s8, %s1599_s29 }
  0x31   : > { %p1602_p11 = pnand %p1600_p10, %p1571_p13  ;;  %p1608_p3 = scmp.lt.u32.totalorder %s1599_s29, %s1817_s4 }
  0x32   : > { %p1607_p2 = por %p1606_p0, %p1605_p12 }
  0x33   : > { %p1603_p8 = pneg %p1602_p11 }
  0x34   : > { %p1609_p4 = por %p1608_p3, %p1607_p2 }
  0x36   : > { %p1610_p1 = pnand %p1609_p4, %p1603_p8 }
  0x38   : > { %1613 = shalt.err (!%p1610_p1)
}
  0x39   : > { %s1614_s22 = scalar_lea.vmem %s166_s6, 32  ;;  %s1686_s17 = smov [#allocation4]  }
  0x3a   : > { %p1615_p5 = scmp.ne.s32.totalorder %s166_s6, %s1614_s22  ;;  %s1619_s18 = sshll.u32 %s1686_s17, 4  ;;  %s1620_s18 = int_to_ptr.vmem [resolvable:$false] %s1619_s18 }
  0x3b   : > { %s1621_s19 = scalar_lea.vmem %s1620_s18, 64  ;;  %p1622_p7 = scmp.lt.s32.totalorder %s166_s6, %s1620_s18 }
  0x3c   : > { %p1617_p10 = pnand %p1615_p5, %p1571_p13  ;;  %p1623_p6 = scmp.lt.s32.totalorder %s1621_s19, %s1614_s22 }
  0x3e   : > { %p1618_p11 = pneg %p1617_p10  ;;  %p1624_p0 = por %p1623_p6, %p1622_p7 }
  0x40   : > { %p1625_p12 = pnand %p1624_p0, %p1618_p11 }
  0x42   : > { %1628 = shalt.err (!%p1625_p12)
}
  0x43   : > { %1501 = dma.hbm_to_vmem [thread:$0]  (!%p1770_p9), %s1817_s4, 32, %s166_s6, %s152_s27  }
  0x44   : > { %p2009_p8 = scmp.ne.s32.totalorder %s2008_s23, 0 }
  0x45   : > { %s176_s24 = sand.u32 (!%p2009_p8), 1, %s1667_s10   ;;  %p2010_p13 = scmp.ne.s32.totalorder (!%p2009_p8), %s2004_s20, 0 }
  0x46   : > { %174 = sbr.rel (%p2009_p8) target bundleno = 402 (0x192), region = 28  ;;  %s1270_s25 = sshll.u32 (!%p2009_p8), %s176_s24, 3 }
  0x47   : > { %s177_s26 = scalar_lea.sflag (!%p2009_p8), [#allocation3], %s176_s24  ;;  %s180_s28 = scalar_lea.vmem (!%p2009_p8), [#allocation2], %s1270_s25 }
  0x4d   : > { %1654 = dma.done.wait (%p2010_p13), %s177_s26, 128  }
  0x4e   : > { %1656 = vsyncadd (%p2010_p13), %s177_s26, 4294967168  ;;  %s1271_s5 = sshll.u32 %s176_s24, 1  ;;  %s186_s29 = scalar_lea.sflag [#allocation5], %s176_s24 }
  0x4f   : > { %s1846_s30 = scalar_lea.vmem [#allocation4], %s1271_s5 }
  0x50   : > { %1658 = dma.done.wait (%p2010_p13), %s186_s29, 32  }
  0x51   : > { %1660 = vsyncadd (%p2010_p13), %s186_s29, 4294967264  ;;  %p217_p7 = scmp.lt.s32.totalorder %s1675_s12, 1  ;;  %v1687_v0 = vmov 1.0|1.0   ;;  %vm226_vm0 = vcmask 7168   ;;  %vm228_vm1 = vcmask 4096   ;;  %v740_v29 = vlaneseq }
  0x52   : > { %1427 = vmatprep.subr.bf16.mxu0 %v1687_v0  ;;  %1443 = vmatprep.subr.bf16.mxu1 %v1687_v0  ;;  %vm701_vm2 = vcmask 1043456   ;;  %v1688_v1 = vmov 0.0   ;;  %v230_v2 = vld [vmem:[%s180_s28] sm:$0xff]  ;;  %v1905_v40 = vld [vmem:[%s1846_s30] sm:$0x3]  ;;  %v1689_v58 = vmov 1.0  }
  0x53   : > { %1428 = vmatpush3.bf16.msra.mxu0 %v1687_v0  ;;  %1444 = vmatpush3.bf16.msra.mxu1 %v1687_v0  ;;  %s2019_s12 = smov (!%p217_p7, %s1675_s12), 1  ;;  %v697_v3 = vcombine.high %v230_v2, %v230_v2  ;;  %v702_v4 = vsel %vm701_vm2, %v230_v2, -inf  ;;  %v1901_v34 = vshrl.u32 %v740_v29, 7  ;;  %vm782_vm5 = vcmp.eq.s32.totalorder %v1905_v40, 0 }
  0x54   : > { %1429 = vmatprep.subr.bf16.mxu0 %v1687_v0  ;;  %1445 = vmatprep.subr.bf16.mxu1 %v1687_v0  ;;  %s1286_s20 = sshll.u32 %s2019_s12, 4  ;;  %v703_v5 = vrot.slane %v702_v4, 4  ;;  %vm1143_vm6 = vcmask 3072   ;;  %vm1153_vm7 = vcmask 0  }
  0x55   : > { %s1863_s6 = scalar_lea.vmem %s2001_s2, %s1286_s20  ;;  %v709_v6 = vsel %vm701_vm2, %v697_v3, -inf  ;;  %v744_v39 = vsub.s32 0, %v1901_v34  ;;  %v748_v42 = vsub.s32 1, %v1901_v34 }
  0x56   : > { %227 = vst.msk [vmem:[%s1863_s6] sm:$0xff] %vm226_vm0, %v1688_v1  ;;  %v704_v7 = vmax.f32 %v702_v4, %v703_v5  ;;  %v710_v8 = vrot.slane %v709_v6, 4 }
  0x57   : > { %1430 = vmatpush3.bf16.msra.mxu0 %v1687_v0  ;;  %1446 = vmatpush3.bf16.msra.mxu1 %v1687_v0  ;;  %229 = vst.msk [vmem:[%s1863_s6 + $0x8] sm:$0x1f] %vm228_vm1, %v1688_v1  ;;  %v1911_v43 = vrot.slane %v1905_v40, %v744_v39  ;;  %v749_v44 = vrot.slane %v1905_v40, %v748_v42 }
  0x58   : > { %1431 = vmatprep.subr.bf16.mxu0 %v1687_v0  ;;  %1447 = vmatprep.subr.bf16.mxu1 %v1687_v0  ;;  %v705_v9 = vrot.slane %v704_v7, 2  ;;  %v711_v10 = vmax.f32 %v709_v6, %v710_v8 }
  0x59   : > { %vm750_vm3 = vcmp.eq.s32.totalorder %v1901_v34, %v1911_v43  ;;  %vm751_vm4 = vcmp.eq.s32.totalorder %v1901_v34, %v749_v44 }
  0x5a   : > { %v712_v11 = vrot.slane %v711_v10, 2  ;;  %v706_v12 = vmax.f32 %v704_v7, %v705_v9  ;;  %v1278_v46 = vsel %vm750_vm3, 1.0, %v1688_v1  ;;  %v1279_v49 = vsel %vm751_vm4, 1.0, %v1688_v1 }
  0x5b   : > { %1432 = vmatpush3.bf16.msra.mxu0 %v1687_v0  ;;  %1448 = vmatpush3.bf16.msra.mxu1 %v1687_v0 }
  0x5c   : > { %1433 = vmatprep.subr.bf16.mxu0 %v1687_v0  ;;  %1449 = vmatprep.subr.bf16.mxu1 %v1687_v0  ;;  %v713_v13 = vmax.f32 %v711_v10, %v712_v11  ;;  %v707_v14 = vrot.slane %v706_v12, 1 }
  0x5e   : > { %v714_v15 = vrot.slane %v713_v13, 1  ;;  %v708_v16 = vmax.f32 %v706_v12, %v707_v14 }
  0x5f   : > { %1434 = vmatpush3.bf16.msra.mxu0 %v1687_v0  ;;  %1450 = vmatpush3.bf16.msra.mxu1 %v1687_v0 }
  0x60   : > { %1435 = vmatprep.subr.bf16.mxu0 %v1687_v0  ;;  %1451 = vmatprep.subr.bf16.mxu1 %v1687_v0  ;;  %v715_v17 = vmax.f32 %v713_v13, %v714_v15  ;;  %v716_v18 = vsub.f32 %v230_v2, %v708_v16  ;;  %v1690_v2 = vmov 1966171168  }
  0x62   : > { %v717_v19 = vsub.f32 %v697_v3, %v715_v17  ;;  %v718_v20 = vmul.f32 1.442695, %v716_v18  ;;  %v791_v3 = vunpack.c.l.s4 %v1690_v2 }
  0x63   : > { %1436 = vmatpush3.bf16.msra.mxu0 %v1687_v0  ;;  %1452 = vmatpush3.bf16.msra.mxu1 %v1687_v0 }
  0x64   : > { %1437 = vmatprep.subr.bf16.mxu0 %v1687_v0  ;;  %1453 = vmatprep.subr.bf16.mxu1 %v1687_v0  ;;  %v720_v21 = vmul.f32 1.442695, %v717_v19  ;;  %1557 = vpow2.f32 %v718_v20  ;;  %v792_v10 = vunpack.c.0.s8 %v791_v3  ;;  %v831_v20 = vcombine.low %v1689_v58, %v1689_v58 }
  0x66   : > { %1559 = vpow2.f32 %v720_v21  ;;  %v795_v15 = vsub.s32 %v792_v10, %v1901_v34 }
  0x67   : > { %1438 = vmatpush3.bf16.msra.mxu0 %v1687_v0  ;;  %1454 = vmatpush3.bf16.msra.mxu1 %v1687_v0 }
  0x68   : > { %1439 = vmatprep.subr.bf16.mxu0 %v1687_v0  ;;  %1455 = vmatprep.subr.bf16.mxu1 %v1687_v0 }
  0x6b   : > { %1440 = vmatpush3.bf16.msra.mxu0 %v1687_v0  ;;  %1456 = vmatpush3.bf16.msra.mxu1 %v1687_v0 }
  0x6c   : > { %1441 = vmatprep.subr.bf16.mxu0 %v1687_v0  ;;  %1457 = vmatprep.subr.bf16.mxu1 %v1687_v0 }
  0x6e   : > { %v1558_v22 = vpop.eup %1557 }
  0x6f   : > { %1442 = vmatpush3.bf16.msra.mxu0 %v1687_v0  ;;  %1458 = vmatpush3.bf16.msra.mxu1 %v1687_v0  ;;  %v722_v23 = vsel %vm701_vm2, %v1558_v22, 0.0 }
  0x70   : > { %1459 = vmatprep.subr.bf16.mxu0 %v1687_v0  ;;  %1475 = vmatprep.subr.bf16.mxu1 %v1687_v0  ;;  %v1560_v24 = vpop.eup %1559  ;;  %v723_v25 = vrot.slane %v722_v23, 4 }
  0x71   : > { %v729_v26 = vsel %vm701_vm2, %v1560_v24, 0.0 }
  0x72   : > { %v730_v27 = vrot.slane %v729_v26, 4  ;;  %v724_v28 = vadd.f32 %v723_v25, %v722_v23 }
  0x74   : > { %v731_v30 = vadd.f32 %v730_v27, %v729_v26  ;;  %v725_v31 = vrot.slane %v724_v28, 2  ;;  %v1691_v26 = vmov 0.6  }
  0x75   : > { %v806_v27 = vsel %vm782_vm5, 0.4, %v1691_v26 }
  0x76   : > { %v732_v32 = vrot.slane %v731_v30, 2  ;;  %v726_v33 = vadd.f32 %v725_v31, %v724_v28  ;;  %v838_v28 = vrot.slane %v831_v20, %v795_v15 }
  0x78   : > { %v733_v35 = vadd.f32 %v732_v32, %v731_v30  ;;  %v727_v36 = vrot.slane %v726_v33, 1 }
  0x7a   : > { %v734_v37 = vrot.slane %v733_v35, 1  ;;  %v728_v38 = vadd.f32 %v727_v36, %v726_v33  ;;  %v845_v33 = vrot.slane %v838_v28, %v795_v15 }
  0x7c   : > { %v735_v41 = vadd.f32 %v734_v37, %v733_v35  ;;  %1561 = vrcp.f32 %v728_v38 }
  0x7e   : > { %1563 = vrcp.f32 %v735_v41  ;;  %v1145_v41 = vld [vmem:[%s1863_s6 + $0x4] sm:$0xf] }
  0x86   : > { %v1562_v45 = vpop.eup %1561 }
  0x87   : > { %v738_v47 = vmul.f32 %v1562_v45, %v1558_v22 }
  0x88   : > { %v1564_v48 = vpop.eup %1563 }
  0x89   : > { %v739_v50 = vmul.f32 %v1564_v48, %v1560_v24  ;;  %v758_v51 = vmul.f32 %v1278_v46, %v738_v47  ;;  %v783_v7 = vsub.f32 1.0, %v738_v47  ;;  %v1141_v46 = vld [vmem:[%s1863_s6] sm:$0xf] }
  0x8b   : > { %v759_v52 = vmul.f32 %v1279_v49, %v739_v50  ;;  %984 = vmatprep.mubr.f32.mxu1 %v739_v50  ;;  %v760_v53 = vsel %vm701_vm2, %v758_v51, 0.0  ;;  %v784_v5 = vsub.f32 1.0, %v739_v50  ;;  %v785_v13 = vmul.f32 %v783_v7, %v783_v7  ;;  %v1148_v49 = vld [vmem:[%s1863_s6 + $0x8] sm:$0xf] }
  0x8c   : > { %v761_v54 = vrot.slane %v760_v53, 4  ;;  %985 = vmatmul.mubr.f32.vlgmr.msra.gmra.mrb[0].mxu1 %v738_v47 }
  0x8d   : > { %v767_v55 = vsel %vm701_vm2, %v759_v52, 0.0  ;;  %914 = vmatprep.mubr.f32.mxu0 %v759_v52  ;;  %1476 = vmatpush3.bf16.msra.mxu1 %v1687_v0  ;;  %v786_v12 = vmul.f32 %v784_v5, %v784_v5 }
  0x8e   : > { %v768_v56 = vrot.slane %v767_v55, 4  ;;  %v762_v57 = vadd.f32 %v761_v54, %v760_v53  ;;  %915 = vmatmul.mubr.f32.vlgmr.msra.gmra.mrb[0].mxu0 %v758_v51  ;;  %1477 = vmatprep.subr.bf16.mxu1 %v1687_v0  ;;  %v1151_v54 = vld [vmem:[%s1863_s6 + $0xc] sm:$0x1] }
  0x8f   : > { %1460 = vmatpush3.bf16.msra.mxu0 %v1687_v0  ;;  %1280 = vmatprep.mubr.msk.f32.mxu0 %vm751_vm4, %v1689_v58  ;;  %v789_v14 = vcombine.low %v785_v13, %v786_v12 }
  0x90   : > { %v769_v59 = vadd.f32 %v768_v56, %v767_v55  ;;  %v763_v60 = vrot.slane %v762_v57, 2  ;;  %1461 = vmatprep.subr.bf16.mxu0 %v1687_v0 }
  0x91   : > { %1478 = vmatpush3.bf16.msra.mxu1 %v1687_v0  ;;  %v796_v16 = vrot.slane %v789_v14, %v795_v15 }
  0x92   : > { %v770_v61 = vrot.slane %v769_v59, 2  ;;  %v764_v62 = vadd.f32 %v763_v60, %v762_v57  ;;  %1479 = vmatprep.subr.bf16.mxu1 %v1687_v0 }
  0x93   : > { %1462 = vmatpush3.bf16.msra.mxu0 %v1687_v0  ;;  %v803_v21 = vrot.slane %v796_v16, %v795_v15 }
  0x94   : > { %v771_v63 = vadd.f32 %v770_v61, %v769_v59  ;;  %v765_v1 = vrot.slane %v764_v62, 1  ;;  %1463 = vmatprep.subr.bf16.mxu0 %v1687_v0 }
  0x95   : > { %1480 = vmatpush3.bf16.msra.mxu1 %v1687_v0  ;;  %v805_v25 = vsel %vm782_vm5, %v803_v21, 1.0 }
  0x96   : > { %v772_v4 = vrot.slane %v771_v63, 1  ;;  %v766_v6 = vadd.f32 %v765_v1, %v764_v62  ;;  %1481 = vmatprep.subr.bf16.mxu1 %v1687_v0  ;;  %v807_v30 = vmul.f32 %v806_v27, %v805_v25 }
  0x97   : > { %1464 = vmatpush3.bf16.msra.mxu0 %v1687_v0 }
  0x98   : > { %v773_v8 = vadd.f32 %v772_v4, %v771_v63  ;;  %v774_v9 = vadd.f32 1e-06, %v766_v6  ;;  %1465 = vmatprep.subr.bf16.mxu0 %v1687_v0 }
  0x99   : > { %1482 = vmatpush3.bf16.msra.mxu1 %v1687_v0 }
  0x9a   : > { %v775_v11 = vadd.f32 1e-06, %v773_v8  ;;  %1565 = vlog2.f32 %v774_v9  ;;  %1483 = vmatprep.subr.bf16.mxu1 %v1687_v0 }
  0x9b   : > { %1466 = vmatpush3.bf16.msra.mxu0 %v1687_v0 }
  0x9c   : > { %1567 = vlog2.f32 %v775_v11  ;;  %1467 = vmatprep.subr.bf16.mxu0 %v1687_v0 }
  0x9d   : > { %1484 = vmatpush3.bf16.msra.mxu1 %v1687_v0 }
  0x9e   : > { %1485 = vmatprep.subr.bf16.mxu1 %v1687_v0 }
  0x9f   : > { %1468 = vmatpush3.bf16.msra.mxu0 %v1687_v0 }
  0xa0   : > { %1469 = vmatprep.subr.bf16.mxu0 %v1687_v0 }
  0xa1   : > { %1486 = vmatpush3.bf16.msra.mxu1 %v1687_v0 }
  0xa2   : > { %1487 = vmatprep.subr.bf16.mxu1 %v1687_v0 }
  0xa3   : > { %1470 = vmatpush3.bf16.msra.mxu0 %v1687_v0 }
  0xa4   : > { %v1566_v17 = vpop.eup %1565  ;;  %1471 = vmatprep.subr.bf16.mxu0 %v1687_v0 }
  0xa5   : > { %v777_v18 = vmul.f32 0.6931472, %v1566_v17  ;;  %1488 = vmatpush3.bf16.msra.mxu1 %v1687_v0 }
  0xa6   : > { %v1568_v19 = vpop.eup %1567  ;;  %1489 = vmatprep.subr.bf16.mxu1 %v1687_v0 }
  0xa7   : > { %v779_v22 = vmul.f32 0.6931472, %v1568_v19  ;;  %v780_v23 = vsub.f32 0.0, %v777_v18  ;;  %1472 = vmatpush3.bf16.msra.mxu0 %v1687_v0 }
  0xa8   : > { %1473 = vmatprep.subr.bf16.mxu0 %v1687_v0 }
  0xa9   : > { %v781_v24 = vsub.f32 0.0, %v779_v22  ;;  %1490 = vmatpush3.bf16.msra.mxu1 %v1687_v0 }
  0xab   : > { %1474 = vmatpush3.bf16.msra.mxu0 %v1687_v0  ;;  %v810_v29 = vcombine.low %v780_v23, %v781_v24 }
  0xad   : > { %v817_v31 = vrot.slane %v810_v29, %v795_v15 }
  0xae   : > { %1281 = vmatmul.mubr.msk.f32.vlgmr.msra.gmra.mrb[2].mxu0 %vm750_vm3, %v1689_v58 }
  0xaf   : > { %v824_v32 = vrot.slane %v817_v31, %v795_v15 }
  0xb1   : > { %v826_v35 = vmul.f32 %v824_v32, %v807_v30 }
  0xb3   : > { %v847_v36 = vmul.f32 %v845_v33, %v826_v35 }
  0xb5   : > { %v1068_v37 = vrot.slane %v847_v36, %v748_v42  ;;  %v1064_v0 = vrot.slane %v847_v36, %v744_v39 }
  0xb7   : > { %1135 = vmatprep.mubr.f32.mxu1 %v1068_v37 }
  0xb8   : > { %1136 = vmatmul.mubr.f32.vlgmr.msra.gmra.mrb[2].mxu1 %v1064_v0 }
 0x15f   : > { %v1354_v38 = vpop.f32.mrb[0].mxu1 }
 0x160   : > { %v1355_v40 = vpop.f32.mrb[1].mxu1 }
 0x161   : > { %v1319_v43 = vpop.f32.mrb[0].mxu0  ;;  %v1356_v44 = vadd.f32 %v1355_v40, %v1354_v38 }
 0x162   : > { %v1320_v45 = vpop.f32.mrb[1].mxu0 }
 0x163   : > { %v1321_v47 = vadd.f32 %v1320_v45, %v1319_v43  ;;  %v1146_v48 = vadd.f32 %v1356_v44, %v1145_v41 }
 0x165   : > { %v1142_v42 = vadd.f32 %v1321_v47, %v1141_v46  ;;  %1147 = vst.msk [vmem:[%s1863_s6 + $0x4] sm:$0xf] %vm1143_vm6, %v1146_v48 }
 0x167   : > { %1144 = vst.msk [vmem:[%s1863_s6] sm:$0xf] %vm1143_vm6, %v1142_v42 }
 0x181   : > { %v1389_v34 = vpop.f32.mrb[2].mxu0 }
 0x182   : > { %v1390_v39 = vpop.f32.mrb[3].mxu0 }
 0x183   : > { %v1391_v50 = vadd.f32 %v1390_v39, %v1389_v34 }
 0x185   : > { %v1149_v51 = vadd.f32 %v1391_v50, %v1148_v49 }
 0x187   : > { %1150 = vst.msk [vmem:[%s1863_s6 + $0x8] sm:$0xf] %vm1143_vm6, %v1149_v51 }
 0x18b   : > { %v1424_v52 = vpop.f32.mrb[2].mxu1 }
 0x18c   : > { %v1425_v53 = vpop.f32.mrb[3].mxu1 }
 0x18d   : > { %v1426_v55 = vadd.f32 %v1425_v53, %v1424_v52 }
 0x18f   : > { %v1152_v56 = vadd.f32 %v1426_v55, %v1151_v54 }
 0x191   : > { %1154 = vst.msk [vmem:[%s1863_s6 + $0xc] sm:$0x1] %vm1153_vm7, %v1152_v56 }
 0x192 PF: > { %s18_s14 = sadd.s32 1, %s1683_s14   ;;  %s2011_s9 = smov %s1667_s10 }
 0x193   : > { %p15_p9 = scmp.ge.s32.totalorder %s18_s14, 4   ;;  %s2012_s10 = smov %s1671_s11 }
 0x194   : > { %s2013_s11 = smov %s1756_s21  ;;  %s2014_s12 = smov %s1679_s13 }
 0x195   : > { %s2015_s13 = smov %s2017_s16  ;;  %17 = sbr.rel (!%p15_p9) target bundleno = 6 (0x6), region = 93 }
 0x19c   :  { %1176 = vsyncpa [#allocation3], 1 }
 0x19d   :  { %1178 = vsyncpa [#allocation3 + $0x1], 1 }
 0x19e   :  { %1179 = vsyncpa [#allocation5], 1 }
 0x19f   :  { %1181 = vsyncpa [#allocation5 + $0x1], 1 }

</bundles_post_ra>
